<compile_context>
chip_gen: v5e
topology: v5e:2x2
jax: 0.10.0
libtpu: 0.0.40
codegen_flags: <defaults>
</compile_context>

<pallas_src>
import jax
import jax.numpy as jnp
from jax.experimental import pallas as pl
from jax.experimental.pallas import tpu as pltpu

_LANE = 128
_PAD_LOGIT = -1e30  # pad logits with this (labels padded with 0) -> error ~ -1e30,
                    # sorts to the very end, ELU(err)+1 underflows to exactly 0.


def _round_up(x, m):
    return ((x + m - 1) // m) * m


# ----------------------------------------------------------------------------
# Kernel 1: negated hinge errors (the sort key), tiled (BR1, 128) blocks
# ----------------------------------------------------------------------------
def _neg_errors_kernel(logit_ref, label_ref, out_ref):
    signs = 2.0 * label_ref[...].astype(jnp.float32) - 1.0
    # negated error:  -(1 - logit*signs) == logit*signs - 1   (bit-exact)
    out_ref[...] = logit_ref[...] * signs - 1.0


def _compute_neg_errors(logits_2d, labels_2d, block_rows):
    r_pad, lane = logits_2d.shape
    return pl.pallas_call(
        _neg_errors_kernel,
        out_shape=jax.ShapeDtypeStruct((r_pad, lane), jnp.float32),
        grid=(r_pad // block_rows,),
        in_specs=[
            pl.BlockSpec((block_rows, lane), lambda i: (i, 0)),
            pl.BlockSpec((block_rows, lane), lambda i: (i, 0)),
        ],
        out_specs=pl.BlockSpec((block_rows, lane), lambda i: (i, 0)),
        compiler_params=pltpu.CompilerParams(dimension_semantics=("parallel",)),
    )(logits_2d, labels_2d)


# ----------------------------------------------------------------------------
# Kernel 2: per-block Lovasz gradient + ELU + partial reduction (parallel grid)
# ----------------------------------------------------------------------------
def _lovasz_block_kernel(gts_ref, offs_ref,                      # scalar prefetch (SMEM)
                         tri_incl_ref, tri_strict_ref, pbase_ref,  # resident constants
                         nerr_ref, gt_ref,                       # streamed sorted data
                         out_ref):
    i = pl.program_id(0)
    br, lane = nerr_ref.shape

    gt_bf = gt_ref[...]                                   # (BR, 128) bf16 in {0,1}
    err = -nerr_ref[...]                                  # sorted errors (descending)

    gts = gts_ref[0].astype(jnp.float32)                  # total positives
    base_cnt = offs_ref[i].astype(jnp.float32)            # positives before this block

    # Inclusive intra-row prefix sums on the MXU (bf16 0/1 operands, f32 acc -> exact).
    row_cs = jnp.dot(gt_bf, tri_incl_ref[...],
                     preferred_element_type=jnp.float32)  # (BR, 128)
    # Cross-row offsets: exclusive prefix of the per-row totals (last column).
    row_tot = row_cs[:, lane - 1:lane]                    # (BR, 1)
    row_off = jnp.dot(tri_strict_ref[...], row_tot,
                      preferred_element_type=jnp.float32)  # (BR, 1)

    gt = gt_bf.astype(jnp.float32)
    cs = row_cs + row_off + base_cnt       # inclusive global cumsum(gt), exact ints

    # Global flat index of each element (exact f32 integers, P_pad < 2**24).
    block_base = (i * (br * lane)).astype(jnp.float32)
    p = pbase_ref[...] + block_base                       # (BR, 128)

    # lovasz_grad (Alg. 1), algebraically fused to minimize live temporaries:
    #   inter   = gts - cs            union   = inter + p + 1
    #   inter_x = gts - (cs - gt)     union_x = inter_x + p
    #   grad[0] = 1 - inter/union ;   grad[k] = inter_x/union_x - inter/union
    inter = gts - cs
    inter_x = inter + gt
    union = inter + (p + 1.0)
    union_x = inter_x + p
    union_x = jnp.where(union_x == 0.0, 1.0, union_x)     # 0/0 guard (p==0, gts==0)
    grad = inter_x / union_x - inter / union
    grad = jnp.where(p == 0.0, 1.0 - inter / union, grad)

    # ELU(err) + 1 == err + 1 for err > 0, exp(err) otherwise (padded tail -> 0).
    act = jnp.where(err > 0.0, err + 1.0, jnp.exp(err))

    partial = jnp.sum(act * grad, axis=0, keepdims=True)  # (1, 128) lane-dense
    out_ref[...] = jnp.broadcast_to(partial.reshape(1, 1, lane), (1, 8, lane))


def _lovasz_reduce(gts_i32, offs_i32, tri_incl, tri_strict, p_base,
                   nerr_2d, gt_2d, block_rows):
    r_pad, lane = nerr_2d.shape
    n_blocks = r_pad // block_rows
    partials = pl.pallas_call(
        _lovasz_block_kernel,
        out_shape=jax.ShapeDtypeStruct((n_blocks, 8, lane), jnp.float32),
        grid_spec=pltpu.PrefetchScalarGridSpec(
            num_scalar_prefetch=2,
            grid=(n_blocks,),
            in_specs=[
                pl.BlockSpec((lane, lane), lambda i, g, o: (0, 0)),              # tri_incl
                pl.BlockSpec((block_rows, block_rows), lambda i, g, o: (0, 0)),  # tri_strict
                pl.BlockSpec((block_rows, lane), lambda i, g, o: (0, 0)),        # p_base
                pl.BlockSpec((block_rows, lane), lambda i, g, o: (i, 0)),        # sorted -err
                pl.BlockSpec((block_rows, lane), lambda i, g, o: (i, 0)),        # sorted labels
            ],
            out_specs=pl.BlockSpec((1, 8, lane), lambda i, g, o: (i, 0, 0)),
        ),
        compiler_params=pltpu.CompilerParams(dimension_semantics=("parallel",)),
    )(gts_i32, offs_i32, tri_incl, tri_strict, p_base, nerr_2d, gt_2d)
    return jnp.sum(partials[:, 0, :])


# ----------------------------------------------------------------------------
# Module wrapper: LovaszLoss.forward(logit, labels)
# ----------------------------------------------------------------------------
def lovasz_loss(logits, labels):
    """logits, labels: [B, H, W]; returns scalar f32 binary Lovasz hinge loss."""
    P = int(logits.size)

    logits_flat = jnp.reshape(logits, (-1,)).astype(jnp.float32)
    labels_flat = jnp.reshape(labels, (-1,)).astype(jnp.bfloat16)  # 0/1 -> exact in bf16

    # lane/sublane-dense layout: pad flat length to R_pad * 128
    R = -(-P // _LANE)
    if R <= 256:
        r_pad = _round_up(R, 8)
        br2 = r_pad            # reduce kernel: single block
        br1 = r_pad            # errors kernel: single block
    elif R <= 1024:
        r_pad = _round_up(R, 256)
        br2 = 256
        br1 = r_pad
    else:
        r_pad = _round_up(R, 1024)
        br2 = 256
        br1 = 1024
    p_pad = r_pad * _LANE
    assert p_pad < 2 ** 24, "f32 index/cumsum arithmetic exact only for P_pad < 2**24"
    pad = p_pad - P

    logits_p = jnp.pad(logits_flat, (0, pad), constant_values=_PAD_LOGIT)
    labels_p = jnp.pad(labels_flat, (0, pad), constant_values=0)

    # Kernel 1: negated hinge errors (= the ascending sort key).
    nerr_2d = _compute_neg_errors(logits_p.reshape(r_pad, _LANE),
                                  labels_p.reshape(r_pad, _LANE), br1)

    # Ascending co-sort on the negated key == descending sort of the errors.
    # TODO(synk): the global sort has no clean Pallas/TPU kernel equivalent; it
    # stays in plain JAX (jax.lax.sort).
    nerr_sorted, gt_sorted = jax.lax.sort(
        (nerr_2d.reshape(-1), labels_p), num_keys=1)
    nerr_s2d = nerr_sorted.reshape(r_pad, _LANE)
    gt_s2d = gt_sorted.reshape(r_pad, _LANE)

    # Pass A (tiny JAX reduction): per-block positive counts -> exclusive block
    # offsets + global total, fed to the kernel through scalar prefetch.
    n_blocks = r_pad // br2
    blk_sums = jnp.sum(gt_s2d.astype(jnp.float32).reshape(n_blocks, -1), axis=1)
    gts_i32 = jnp.sum(blk_sums).astype(jnp.int32).reshape(1)
    offs_i32 = (jnp.cumsum(blk_sums) - blk_sums).astype(jnp.int32)

    # Loop-invariant constants (resident in VMEM via constant index_map).
    lj = jax.lax.broadcasted_iota(jnp.int32, (_LANE, _LANE), 0)
    lc = jax.lax.broadcasted_iota(jnp.int32, (_LANE, _LANE), 1)
    tri_incl = (lj <= lc).astype(jnp.bfloat16)                       # (128, 128)
    rr = jax.lax.broadcasted_iota(jnp.int32, (br2, br2), 0)
    rc = jax.lax.broadcasted_iota(jnp.int32, (br2, br2), 1)
    tri_strict = (rc < rr).astype(jnp.float32)                       # (BR, BR)
    p_base = (jax.lax.broadcasted_iota(jnp.float32, (br2, _LANE), 0) * float(_LANE)
              + jax.lax.broadcasted_iota(jnp.float32, (br2, _LANE), 1))

    return _lovasz_reduce(gts_i32, offs_i32, tri_incl, tri_strict, p_base,
                          nerr_s2d, gt_s2d, br2)


# ----------------------------------------------------------------------------
# Pure-JAX reference (mirrors the PyTorch code) for a sanity check
# ----------------------------------------------------------------------------
def _reference_lovasz(logits, labels):
    logits = logits.reshape(-1).astype(jnp.float32)
    labels = labels.reshape(-1).astype(jnp.float32)
    signs = 2.0 * labels - 1.0
    errors = 1.0 - logits * signs
    order = jnp.argsort(-errors)
    errors_sorted = errors[order]
    gt_sorted = labels[order]
    gts = gt_sorted.sum()
    intersection = gts - jnp.cumsum(gt_sorted)
    union = gts + jnp.cumsum(1.0 - gt_sorted)
    jaccard = 1.0 - intersection / union
    grad = jnp.concatenate([jaccard[:1], jaccard[1:] - jaccard[:-1]])
    elu_p1 = jnp.where(errors_sorted > 0, errors_sorted + 1.0, jnp.exp(errors_sorted))
    return jnp.dot(elu_p1, grad)


if __name__ == "__main__":
    key = jax.random.PRNGKey(0)
    k1, k2 = jax.random.split(key)
    B, H, W = 2, 16, 16
    logits = jax.random.normal(k1, (B, H, W), dtype=jnp.float32)
    labels = (jax.random.uniform(k2, (B, H, W)) > 0.5).astype(jnp.float32)

    loss = lovasz_loss(logits, labels)
    jax.block_until_ready(loss)

    ref = _reference_lovasz(logits, labels)
    assert jnp.allclose(loss, ref, rtol=1e-5, atol=1e-5), (loss, ref)

    print("KERNEL_OK")
</pallas_src>

<mosaic_0001>
module attributes {stable_mosaic.version = 11 : i64} {
  func.func @_neg_errors_kernel(%arg0: i32, %arg1: memref<8x128xf32, #tpu.memory_space<vmem>>, %arg2: memref<8x128xbf16, #tpu.memory_space<vmem>>, %arg3: memref<8x128xf32, #tpu.memory_space<vmem>>) attributes {dimension_semantics = [#tpu.dimension_semantics<parallel>], iteration_bounds = array<i64: 1>, scalar_prefetch = 0 : i64, scratch_operands = 0 : i64, tpu.core_type = #tpu.core_type<tc>, window_params = [{transform_indices = @transform_0, window_bounds = array<i64: 8, 128>}, {transform_indices = @transform_1, window_bounds = array<i64: 8, 128>}, {transform_indices = @transform_2, window_bounds = array<i64: 8, 128>}]} {
    %c0 = arith.constant 0 : index
    %c0_0 = arith.constant 0 : index
    %0 = vector.load %arg2[%c0, %c0_0] : memref<8x128xbf16, #tpu.memory_space<vmem>>, vector<8x128xbf16>
    %1 = arith.extf %0 : vector<8x128xbf16> to vector<8x128xf32>
    %cst = arith.constant 2.000000e+00 : f32
    %2 = vector.broadcast %cst : f32 to vector<8x128xf32>
    %3 = arith.mulf %2, %1 : vector<8x128xf32>
    %cst_1 = arith.constant 1.000000e+00 : f32
    %4 = vector.broadcast %cst_1 : f32 to vector<8x128xf32>
    %5 = arith.subf %3, %4 : vector<8x128xf32>
    %c0_2 = arith.constant 0 : index
    %c0_3 = arith.constant 0 : index
    %6 = vector.load %arg1[%c0_2, %c0_3] : memref<8x128xf32, #tpu.memory_space<vmem>>, vector<8x128xf32>
    %7 = arith.mulf %6, %5 : vector<8x128xf32>
    %cst_4 = arith.constant 1.000000e+00 : f32
    %8 = vector.broadcast %cst_4 : f32 to vector<8x128xf32>
    %9 = arith.subf %7, %8 : vector<8x128xf32>
    %c0_5 = arith.constant 0 : index
    %c0_6 = arith.constant 0 : index
    %10 = vector.load %arg3[%c0_5, %c0_6] : memref<8x128xf32, #tpu.memory_space<vmem>>, vector<8x128xf32>
    tpu.vector_store %arg3[%c0_5, %c0_6], %9 {strides = array<i32>} : memref<8x128xf32, #tpu.memory_space<vmem>>, vector<8x128xf32>,
    return
  }
  func.func @transform_0(%arg0: i32) -> (i32, i32) {
    %c0_i32 = arith.constant 0 : i32
    %c0_i32_0 = arith.constant 0 : i32
    return %arg0, %c0_i32 : i32, i32
  }
  func.func @transform_1(%arg0: i32) -> (i32, i32) {
    %c0_i32 = arith.constant 0 : i32
    %c0_i32_0 = arith.constant 0 : i32
    return %arg0, %c0_i32 : i32, i32
  }
  func.func @transform_2(%arg0: i32) -> (i32, i32) {
    %c0_i32 = arith.constant 0 : i32
    %c0_i32_0 = arith.constant 0 : i32
    return %arg0, %c0_i32 : i32, i32
  }
}

</mosaic_0001>

<bundles_post_ra>
// kernel: tpu_custom_call.1
= control target key start
LH: loop header
LB: loop body
LE: loop exit
PB: predicated region body
PF: predicated region fallthrough
CT: control target
= control target key end

     0   :  { %7 = vsyncpa [#allocation3], 0  ;;  %s176_s0 = inlined_call_operand.hbm [shape: f32[8,128], index: 0, kind: input, shape index: {}]   ;;  %s177_s1 = inlined_call_operand.hbm [shape: bf16[8,128], index: 1, kind: input, shape index: {}]   ;;  %s178_s2 = inlined_call_operand.hbm [shape: f32[8,128], index: 2, kind: output, shape index: {}]  }
   0x1   :  { %8 = vsyncpa [#allocation6], 0 }
   0x2   :  { %9 = vsyncpa [#allocation4], 0  ;;  %s15_s11 = sshll.u32 %s176_s0, 4  ;;  %s149_s12 = smov [#allocation2]   ;;  %s16_s11 = int_to_ptr.hbm [resolvable:$true] %s15_s11 }
   0x3   :  { %s17_s13 = sshll.u32 %s149_s12, 4  ;;  %s26_s16 = sshll.u32 %s177_s1, 4  ;;  %s18_s13 = int_to_ptr.vmem [resolvable:$true] %s17_s13  ;;  %s27_s16 = int_to_ptr.hbm [resolvable:$true] %s26_s16 }
   0x4   :  { %20 = dma.hbm_to_vmem [thread:$0]  %s16_s11, 128, %s18_s13, [#allocation3]  }
   0x5   :  { %s150_s17 = smov [#allocation5]  }
   0x6   :  { %s28_s18 = sshll.u32 %s150_s17, 4  ;;  %s29_s18 = int_to_ptr.vmem [resolvable:$true] %s28_s18 }
   0x7   :  { %31 = dma.hbm_to_vmem [thread:$0]  %s27_s16, 64, %s29_s18, [#allocation6]  }
   0x8   :  { %143 = dma.done.wait [#allocation3], 128  }
   0x9   :  { %144 = vsyncadd [#allocation3], 4294967168 }
   0xa   :  { %145 = dma.done.wait [#allocation6], 64  }
   0xb   :  { %146 = vsyncadd [#allocation6], 4294967232  ;;  %v40_v0 = vld [vmem:[#allocation5] sm:$0xf]  ;;  %v44_v3 = vld [vmem:[#allocation2] sm:$0xff]  ;;  %s151_s0 = smov [#allocation7]  }
   0xc   :  { %v41_v1 = vunpack.c.l.bf16 %v40_v0  ;;  %s53_s19 = sshll.u32 %s151_s0, 4  ;;  %s55_s1 = sshll.u32 %s178_s2, 4  ;;  %s54_s19 = int_to_ptr.vmem [resolvable:$true] %s53_s19  ;;  %s56_s1 = int_to_ptr.hbm [resolvable:$true] %s55_s1 }
   0xe   :  { %v42_v2 = vmul.f32 2.0, %v41_v1 }
  0x10   :  { %v66_v4 = vadd.f32 -1.0, %v42_v2 }
  0x12   :  { %v45_v5 = vmul.f32 %v66_v4, %v44_v3 }
  0x14   :  { %v67_v6 = vadd.f32 -1.0, %v45_v5 }
  0x16   :  { %47 = vst [vmem:[#allocation7] sm:$0xff] %v67_v6 }
  0x17   :  { %58 = dma.vmem_to_hbm [thread:$0]  %s54_s19, 128, %s56_s1, [#allocation4]  }
  0x18   :  { %147 = dma.done.wait [#allocation4], 128  }
  0x19   :  { %148 = vsyncadd [#allocation4], 4294967168 }
  0x1a   :  { %63 = vsyncpa [#allocation3], 1 }
  0x1b   :  { %64 = vsyncpa [#allocation6], 1 }
  0x1c   :  { %65 = vsyncpa [#allocation4], 1 }

</bundles_post_ra>
